<compile_context>
chip_gen: v5e
topology: v5e:2x2
jax: 0.10.0
libtpu: 0.0.40
codegen_flags: <defaults>
</compile_context>

<pallas_src>
import functools

import jax
import jax.numpy as jnp
from jax.experimental import pallas as pl
from jax.experimental.pallas import tpu as pltpu

_LANE = 128      # lane width (last dim)
_SUBLANE = 8     # f32 sublane width (second-last dim)
_ACTIVATIONS = ("Tanh", "ELU", "Linear")


def _round_up(x, m):
    return ((x + m - 1) // m) * m


def _device_kind():
    try:
        return jax.devices()[0].device_kind.lower()
    except Exception:
        return ""


def _use_bf16_act(kind):
    # bf16 EUP path exists on v6e/v7x; v5e (and unknown chips) stay on f32.
    return ("v6" in kind) or ("v7" in kind)


def _vmem_budget_bytes(kind):
    if "v7" in kind:
        return 48 * 1024 * 1024          # v7x: 64 MiB physical VMEM, leave headroom
    if ("v5" in kind) or ("v6" in kind):
        return 100 * 1024 * 1024         # v5e/v6e: 128 MiB physical VMEM
    return 32 * 1024 * 1024              # unknown generation: be conservative


def _vmem_limit_bytes(kind):
    if "v7" in kind:
        return 48 * 1024 * 1024
    if ("v5" in kind) or ("v6" in kind):
        return 100 * 1024 * 1024
    return None                          # keep compiler default on unknown chips


def _mlp_kernel(x_ref, *refs, n_layers, act, act_last, act_in_bf16):
    """Fused MLP forward for one batch tile.

    refs = (wt_0, b_0, wt_1, b_1, ..., wt_{L-1}, b_{L-1}, o_ref)
      wt_l : [in_p, out_p] bf16   (pre-transposed, zero-padded)
      b_l  : [1, out_p]    f32    (zero-padded)
    Intermediate activations stay on-chip for the whole layer stack.
    """
    o_ref = refs[2 * n_layers]
    h = x_ref[...].astype(jnp.bfloat16)                 # bf16 MXU operand
    for l in range(n_layers):
        wt = refs[2 * l][...]                           # bf16 [in_p, out_p]
        b = refs[2 * l + 1][...]                        # f32  [1, out_p]
        y = jnp.dot(h, wt, preferred_element_type=jnp.float32) + b   # f32 acc
        apply_act = (l < n_layers - 1) or act_last
        if apply_act and act != "Linear":
            if act_in_bf16:
                y = y.astype(jnp.bfloat16)              # bf16 EUP on v6e/v7x
            if act == "Tanh":
                y = jnp.tanh(y)
            else:  # "ELU", alpha=1: x if x > 0 else exp(x) - 1
                y = jnp.where(y > 0, y, jnp.exp(y) - 1.0)
        # Dropout == identity in eval mode.
        if l < n_layers - 1:
            h = y.astype(jnp.bfloat16)
        else:
            o_ref[...] = y.astype(o_ref.dtype)


def init_linear_params(key, in_dim, out_dim):
    """Deterministic PyTorch-style init: U(-1/sqrt(in), 1/sqrt(in)); W: [out, in]."""
    kw, kb = jax.random.split(key)
    bound = 1.0 / jnp.sqrt(jnp.float32(in_dim))
    w = jax.random.uniform(kw, (out_dim, in_dim), jnp.float32, -bound, bound)
    b = jax.random.uniform(kb, (out_dim,), jnp.float32, -bound, bound)
    return w, b


def build_params(key, input_dim, hidden_dim, hidden_layer, output_dim):
    params = []
    key, sub = jax.random.split(key)
    params.append(init_linear_params(sub, input_dim, hidden_dim))
    for _ in range(hidden_layer - 1):
        key, sub = jax.random.split(key)
        params.append(init_linear_params(sub, hidden_dim, hidden_dim))
    key, sub = jax.random.split(key)
    params.append(init_linear_params(sub, hidden_dim, output_dim))
    return params


def prepare_params(params):
    """One-time weight prep (hoisted out of the forward path):
    transpose to [in, out], zero-pad both dims to multiples of 128,
    cast weights to bf16 (MXU operand dtype). Biases stay f32, padded to [1, out_p]."""
    prepped = []
    for (w, b) in params:
        out_dim, in_dim = w.shape
        in_p = _round_up(in_dim, _LANE)
        out_p = _round_up(out_dim, _LANE)
        wt = jnp.zeros((in_p, out_p), jnp.bfloat16)
        wt = wt.at[:in_dim, :out_dim].set(jnp.transpose(w).astype(jnp.bfloat16))
        bp = jnp.zeros((1, out_p), jnp.float32).at[0, :out_dim].set(b)
        prepped.append((wt, bp))
    return prepped


def _footprint_bytes(layers, tile_b, in_p, out_p, single_buffer):
    """Rough VMEM footprint estimate for a pallas_call holding `layers` resident."""
    n_buf = 1 if single_buffer else 2
    total = 0
    for wt, bp in layers:
        total += n_buf * int(wt.size) * 2                 # bf16 weights
        total += n_buf * _SUBLANE * int(bp.shape[1]) * 4  # f32 bias (padded sublane)
    total += 2 * tile_b * in_p * 4      # double-buffered input tile (f32)
    total += 2 * tile_b * out_p * 4     # double-buffered output tile (f32)
    widest = max(max(int(wt.shape[0]), int(wt.shape[1])) for wt, _ in layers)
    total += 4 * tile_b * widest * 4    # activation temporaries (rough upper bound)
    return total


def _pick_tile_b(B, layers, in_p, out_p, kind, budget):
    """Batch tile: multiple of the f32 sublane, big enough to amortize per-step
    overhead, small enough to fit the VMEM budget, and giving >=2 grid steps when
    the batch allows (so both TensorCores get work on v7x)."""
    cap = 512 if "v7" in kind else 1024
    pB0 = _round_up(max(B, 1), _SUBLANE)
    if pB0 >= 2 * _SUBLANE:
        tile_b = min(cap, _round_up(-(-pB0 // 2), _SUBLANE))
    else:
        tile_b = pB0
    while tile_b > _SUBLANE and _footprint_bytes(layers, tile_b, in_p, out_p, True) > budget:
        tile_b = max(_SUBLANE, _round_up(tile_b // 2, _SUBLANE))
    return tile_b


def _mlp_call(x_pad, layers, *, act, act_last, act_in_bf16, tile_b, out_dtype,
              single_buffer, vmem_limit):
    """One pallas_call: batch-tiled grid, `layers` weights resident in VMEM."""
    pB, in_p = x_pad.shape
    out_p = layers[-1][0].shape[1]
    n_layers = len(layers)

    flat_params = []
    in_specs = [pl.BlockSpec((tile_b, in_p), lambda i: (i, 0))]
    for wt, bp in layers:
        flat_params += [wt, bp]
        if single_buffer:
            # Constant index_map -> resident block; one buffer is enough.
            in_specs.append(pl.BlockSpec(wt.shape, lambda i: (0, 0),
                                         pipeline_mode=pl.Buffered(1)))
            in_specs.append(pl.BlockSpec(bp.shape, lambda i: (0, 0),
                                         pipeline_mode=pl.Buffered(1)))
        else:
            in_specs.append(pl.BlockSpec(wt.shape, lambda i: (0, 0)))
            in_specs.append(pl.BlockSpec(bp.shape, lambda i: (0, 0)))

    kernel = functools.partial(_mlp_kernel, n_layers=n_layers, act=act,
                               act_last=act_last, act_in_bf16=act_in_bf16)
    cp_kwargs = dict(dimension_semantics=("parallel",))
    if vmem_limit is not None:
        cp_kwargs["vmem_limit_bytes"] = int(vmem_limit)

    return pl.pallas_call(
        kernel,
        out_shape=jax.ShapeDtypeStruct((pB, out_p), out_dtype),
        grid=(pB // tile_b,),
        in_specs=in_specs,
        out_specs=pl.BlockSpec((tile_b, out_p), lambda i: (i, 0)),
        compiler_params=pltpu.CompilerParams(**cp_kwargs),
    )(x_pad, *flat_params)


def feedforward_forward(x_nchw, prepped, activ_func, output_dim, out_dtype=jnp.float32):
    """Reproduces FeedforwardNeuralNetModel.forward (eval mode)."""
    if activ_func not in _ACTIVATIONS:
        raise ValueError(
            f"Unknown activ_func {activ_func!r}; expected one of {_ACTIVATIONS}")

    B = x_nchw.shape[0]
    x = x_nchw.reshape(B, -1).astype(jnp.float32)        # torch.nn.Flatten()
    in_dim = x.shape[1]
    in_p = prepped[0][0].shape[0]                        # padded input width
    out_p = prepped[-1][0].shape[1]                      # padded output width

    kind = _device_kind()
    bf16_act = _use_bf16_act(kind)
    budget = _vmem_budget_bytes(kind)
    vmem_limit = _vmem_limit_bytes(kind)

    # Fused (all layers resident) vs layer-streaming fallback (v7x / huge hidden_dim).
    fused_ok = _footprint_bytes(prepped, _SUBLANE, in_p, out_p, True) <= budget
    if fused_ok:
        layers_for_tiling = prepped
    else:
        layers_for_tiling = [max(prepped, key=lambda p: int(p[0].size))]
    tile_b = _pick_tile_b(B, layers_for_tiling, in_p, out_p, kind, budget)

    pB = _round_up(B, tile_b)
    # Pad only what is needed: batch rows always; lanes only if in_dim % 128 != 0.
    if pB != B or in_p != in_dim:
        x = jnp.pad(x, ((0, pB - B), (0, in_p - in_dim)))

    def run(single_buffer):
        if fused_ok:
            return _mlp_call(x, prepped, act=activ_func, act_last=False,
                             act_in_bf16=bf16_act, tile_b=tile_b,
                             out_dtype=out_dtype, single_buffer=single_buffer,
                             vmem_limit=vmem_limit)
        # Layer-streaming fallback: weights too large to be fully resident.
        # Each call keeps one layer's weights resident; activations round-trip HBM.
        h = x
        n = len(prepped)
        for l, layer in enumerate(prepped):
            last = (l == n - 1)
            h = _mlp_call(h, [layer], act=activ_func, act_last=not last,
                          act_in_bf16=bf16_act, tile_b=tile_b,
                          out_dtype=(out_dtype if last else jnp.float32),
                          single_buffer=single_buffer, vmem_limit=vmem_limit)
        return h

    try:
        out = run(single_buffer=True)
    except Exception:
        # pl.Buffered(1) rejected by this JAX/Mosaic version: retry with the
        # default double-buffered resident weights (correct, slightly more VMEM).
        out = run(single_buffer=False)

    return out[:B, :output_dim]


def reference_forward(x_nchw, params, activ_func, bf16_act):
    """Pure-JAX reference mirroring the kernel's dtype choices (bf16 MXU operands,
    f32 accumulation, bf16 activations on v6e/v7x).  Intentionally differs slightly
    from PyTorch's pure-f32 forward."""
    h = x_nchw.reshape(x_nchw.shape[0], -1).astype(jnp.bfloat16)
    n = len(params)
    out = None
    for i, (w, b) in enumerate(params):
        y = jnp.dot(h, jnp.transpose(w).astype(jnp.bfloat16),
                    preferred_element_type=jnp.float32) + b
        if i < n - 1:
            if bf16_act:
                y = y.astype(jnp.bfloat16)
            if activ_func == "Tanh":
                y = jnp.tanh(y)
            elif activ_func == "ELU":
                y = jnp.where(y > 0, y, jnp.exp(y) - 1.0)
            h = y.astype(jnp.bfloat16)
        else:
            out = y.astype(jnp.float32)
    return out


if __name__ == "__main__":
    # Small, module-consistent shapes.
    B, C, H, W = 2, 4, 16, 16
    input_dim = C * H * W          # 1024 (Flatten of NCHW image)
    hidden_dim = 32
    hidden_layer = 2
    output_dim = 8
    activ_func = "Tanh"
    dropoutprob = 0.1              # unused at eval time (identity)

    key = jax.random.PRNGKey(0)
    kx, kp = jax.random.split(key)
    x = jax.random.normal(kx, (B, C, H, W), jnp.float32)

    params = build_params(kp, input_dim, hidden_dim, hidden_layer, output_dim)
    prepped = prepare_params(params)   # one-time transpose / pad / bf16 cast

    out = feedforward_forward(x, prepped, activ_func, output_dim)
    out = jax.block_until_ready(out)

    ref = reference_forward(x, params, activ_func, _use_bf16_act(_device_kind()))

    assert out.shape == (B, output_dim), out.shape
    assert jnp.allclose(out, ref, atol=2e-2, rtol=2e-2), (
        float(jnp.max(jnp.abs(out - ref))))

    print("KERNEL_OK")
</pallas_src>

<mosaic_0001>
module attributes {stable_mosaic.version = 11 : i64} {
  func.func @_mlp_kernel(%arg0: i32, %arg1: memref<8x1024xf32, #tpu.memory_space<vmem>>, %arg2: memref<1024x128xbf16, #tpu.memory_space<vmem>>, %arg3: memref<1x128xf32, #tpu.memory_space<vmem>>, %arg4: memref<128x128xbf16, #tpu.memory_space<vmem>>, %arg5: memref<1x128xf32, #tpu.memory_space<vmem>>, %arg6: memref<128x128xbf16, #tpu.memory_space<vmem>>, %arg7: memref<1x128xf32, #tpu.memory_space<vmem>>, %arg8: memref<8x128xf32, #tpu.memory_space<vmem>>) attributes {dimension_semantics = [#tpu.dimension_semantics<parallel>], iteration_bounds = array<i64: 1>, scalar_prefetch = 0 : i64, scratch_operands = 0 : i64, tpu.core_type = #tpu.core_type<tc>, window_params = [{transform_indices = @transform_0, window_bounds = array<i64: 8, 1024>}, {pipeline_mode = #tpu.pipeline_mode<synchronous>, transform_indices = @transform_1, window_bounds = array<i64: 1024, 128>}, {pipeline_mode = #tpu.pipeline_mode<synchronous>, transform_indices = @transform_2, window_bounds = array<i64: 1, 128>}, {pipeline_mode = #tpu.pipeline_mode<synchronous>, transform_indices = @transform_3, window_bounds = array<i64: 128, 128>}, {pipeline_mode = #tpu.pipeline_mode<synchronous>, transform_indices = @transform_4, window_bounds = array<i64: 1, 128>}, {pipeline_mode = #tpu.pipeline_mode<synchronous>, transform_indices = @transform_5, window_bounds = array<i64: 128, 128>}, {pipeline_mode = #tpu.pipeline_mode<synchronous>, transform_indices = @transform_6, window_bounds = array<i64: 1, 128>}, {transform_indices = @transform_7, window_bounds = array<i64: 8, 128>}]} {
    %c0 = arith.constant 0 : index
    %c0_0 = arith.constant 0 : index
    %0 = vector.load %arg1[%c0, %c0_0] : memref<8x1024xf32, #tpu.memory_space<vmem>>, vector<8x1024xf32>
    %1 = arith.truncf %0 : vector<8x1024xf32> to vector<8x1024xbf16>
    %c0_1 = arith.constant 0 : index
    %c0_2 = arith.constant 0 : index
    %2 = vector.load %arg2[%c0_1, %c0_2] : memref<1024x128xbf16, #tpu.memory_space<vmem>>, vector<1024x128xbf16>
    %c0_3 = arith.constant 0 : index
    %c0_4 = arith.constant 0 : index
    %3 = vector.load %arg3[%c0_3, %c0_4] : memref<1x128xf32, #tpu.memory_space<vmem>>, vector<1x128xf32>
    %cst = arith.constant dense<0.000000e+00> : vector<8x128xf32>
    %4 = tpu.matmul %1, %2, %cst {dimension_numbers = #tpu.dot_dimension_numbers<[1], [0], [0], [1], [0, 0, 1, 1], [], []>} : vector<8x1024xbf16>, vector<1024x128xbf16>, vector<8x128xf32> -> vector<8x128xf32>
    %5 = vector.broadcast %3 : vector<1x128xf32> to vector<8x128xf32>
    %6 = arith.addf %4, %5 : vector<8x128xf32>
    %7 = math.tanh %6 : vector<8x128xf32>
    %8 = arith.truncf %7 : vector<8x128xf32> to vector<8x128xbf16>
    %c0_5 = arith.constant 0 : index
    %c0_6 = arith.constant 0 : index
    %9 = vector.load %arg4[%c0_5, %c0_6] : memref<128x128xbf16, #tpu.memory_space<vmem>>, vector<128x128xbf16>
    %c0_7 = arith.constant 0 : index
    %c0_8 = arith.constant 0 : index
    %10 = vector.load %arg5[%c0_7, %c0_8] : memref<1x128xf32, #tpu.memory_space<vmem>>, vector<1x128xf32>
    %cst_9 = arith.constant dense<0.000000e+00> : vector<8x128xf32>
    %11 = tpu.matmul %8, %9, %cst_9 {dimension_numbers = #tpu.dot_dimension_numbers<[1], [0], [0], [1], [0, 0, 1, 1], [], []>} : vector<8x128xbf16>, vector<128x128xbf16>, vector<8x128xf32> -> vector<8x128xf32>
    %12 = vector.broadcast %10 : vector<1x128xf32> to vector<8x128xf32>
    %13 = arith.addf %11, %12 : vector<8x128xf32>
    %14 = math.tanh %13 : vector<8x128xf32>
    %15 = arith.truncf %14 : vector<8x128xf32> to vector<8x128xbf16>
    %c0_10 = arith.constant 0 : index
    %c0_11 = arith.constant 0 : index
    %16 = vector.load %arg6[%c0_10, %c0_11] : memref<128x128xbf16, #tpu.memory_space<vmem>>, vector<128x128xbf16>
    %c0_12 = arith.constant 0 : index
    %c0_13 = arith.constant 0 : index
    %17 = vector.load %arg7[%c0_12, %c0_13] : memref<1x128xf32, #tpu.memory_space<vmem>>, vector<1x128xf32>
    %cst_14 = arith.constant dense<0.000000e+00> : vector<8x128xf32>
    %18 = tpu.matmul %15, %16, %cst_14 {dimension_numbers = #tpu.dot_dimension_numbers<[1], [0], [0], [1], [0, 0, 1, 1], [], []>} : vector<8x128xbf16>, vector<128x128xbf16>, vector<8x128xf32> -> vector<8x128xf32>
    %19 = vector.broadcast %17 : vector<1x128xf32> to vector<8x128xf32>
    %20 = arith.addf %18, %19 : vector<8x128xf32>
    %c0_15 = arith.constant 0 : index
    %c0_16 = arith.constant 0 : index
    %21 = vector.load %arg8[%c0_15, %c0_16] : memref<8x128xf32, #tpu.memory_space<vmem>>, vector<8x128xf32>
    tpu.vector_store %arg8[%c0_15, %c0_16], %20 {strides = array<i32>} : memref<8x128xf32, #tpu.memory_space<vmem>>, vector<8x128xf32>,
    return
  }
  func.func @transform_0(%arg0: i32) -> (i32, i32) {
    %c0_i32 = arith.constant 0 : i32
    %c0_i32_0 = arith.constant 0 : i32
    return %arg0, %c0_i32 : i32, i32
  }
  func.func @transform_1(%arg0: i32) -> (i32, i32) {
    %c0_i32 = arith.constant 0 : i32
    %c0_i32_0 = arith.constant 0 : i32
    %c0_i32_1 = arith.constant 0 : i32
    return %c0_i32, %c0_i32_0 : i32, i32
  }
  func.func @transform_2(%arg0: i32) -> (i32, i32) {
    %c0_i32 = arith.constant 0 : i32
    %c0_i32_0 = arith.constant 0 : i32
    %c0_i32_1 = arith.constant 0 : i32
    return %c0_i32, %c0_i32_0 : i32, i32
  }
  func.func @transform_3(%arg0: i32) -> (i32, i32) {
    %c0_i32 = arith.constant 0 : i32
    %c0_i32_0 = arith.constant 0 : i32
    %c0_i32_1 = arith.constant 0 : i32
    return %c0_i32, %c0_i32_0 : i32, i32
  }
  func.func @transform_4(%arg0: i32) -> (i32, i32) {
    %c0_i32 = arith.constant 0 : i32
    %c0_i32_0 = arith.constant 0 : i32
    %c0_i32_1 = arith.constant 0 : i32
    return %c0_i32, %c0_i32_0 : i32, i32
  }
  func.func @transform_5(%arg0: i32) -> (i32, i32) {
    %c0_i32 = arith.constant 0 : i32
    %c0_i32_0 = arith.constant 0 : i32
    %c0_i32_1 = arith.constant 0 : i32
    return %c0_i32, %c0_i32_0 : i32, i32
  }
  func.func @transform_6(%arg0: i32) -> (i32, i32) {
    %c0_i32 = arith.constant 0 : i32
    %c0_i32_0 = arith.constant 0 : i32
    %c0_i32_1 = arith.constant 0 : i32
    return %c0_i32, %c0_i32_0 : i32, i32
  }
  func.func @transform_7(%arg0: i32) -> (i32, i32) {
    %c0_i32 = arith.constant 0 : i32
    %c0_i32_0 = arith.constant 0 : i32
    return %arg0, %c0_i32 : i32, i32
  }
}

module attributes {stable_mosaic.version = 11 : i64} {
  func.func @_mlp_kernel(%arg0: i32, %arg1: memref<8x1024xf32, #tpu.memory_space<vmem>>, %arg2: memref<1024x128xbf16, #tpu.memory_space<vmem>>, %arg3: memref<1x128xf32, #tpu.memory_space<vmem>>, %arg4: memref<128x128xbf16, #tpu.memory_space<vmem>>, %arg5: memref<1x128xf32, #tpu.memory_space<vmem>>, %arg6: memref<128x128xbf16, #tpu.memory_space<vmem>>, %arg7: memref<1x128xf32, #tpu.memory_space<vmem>>, %arg8: memref<8x128xf32, #tpu.memory_space<vmem>>) attributes {dimension_semantics = [#tpu.dimension_semantics<parallel>], iteration_bounds = array<i64: 1>, scalar_prefetch = 0 : i64, scratch_operands = 0 : i64, tpu.core_type = #tpu.core_type<tc>, window_params = [{transform_indices = @transform_0, window_bounds = array<i64: 8, 1024>}, {pipeline_mode = #tpu.pipeline_mode<synchronous>, transform_indices = @transform_1, window_bounds = array<i64: 1024, 128>}, {pipeline_mode = #tpu.pipeline_mode<synchronous>, transform_indices = @transform_2, window_bounds = array<i64: 1, 128>}, {pipeline_mode = #tpu.pipeline_mode<synchronous>, transform_indices = @transform_3, window_bounds = array<i64: 128, 128>}, {pipeline_mode = #tpu.pipeline_mode<synchronous>, transform_indices = @transform_4, window_bounds = array<i64: 1, 128>}, {pipeline_mode = #tpu.pipeline_mode<synchronous>, transform_indices = @transform_5, window_bounds = array<i64: 128, 128>}, {pipeline_mode = #tpu.pipeline_mode<synchronous>, transform_indices = @transform_6, window_bounds = array<i64: 1, 128>}, {transform_indices = @transform_7, window_bounds = array<i64: 8, 128>}]} {
    %c0 = arith.constant 0 : index
    %c0_0 = arith.constant 0 : index
    %0 = vector.load %arg1[%c0, %c0_0] : memref<8x1024xf32, #tpu.memory_space<vmem>>, vector<8x1024xf32>
    %1 = arith.truncf %0 : vector<8x1024xf32> to vector<8x1024xbf16>
    %c0_1 = arith.constant 0 : index
    %c0_2 = arith.constant 0 : index
    %2 = vector.load %arg2[%c0_1, %c0_2] : memref<1024x128xbf16, #tpu.memory_space<vmem>>, vector<1024x128xbf16>
    %c0_3 = arith.constant 0 : index
    %c0_4 = arith.constant 0 : index
    %3 = vector.load %arg3[%c0_3, %c0_4] : memref<1x128xf32, #tpu.memory_space<vmem>>, vector<1x128xf32>
    %cst = arith.constant dense<0.000000e+00> : vector<8x128xf32>
    %4 = tpu.matmul %1, %2, %cst {dimension_numbers = #tpu.dot_dimension_numbers<[1], [0], [0], [1], [0, 0, 1, 1], [], []>} : vector<8x1024xbf16>, vector<1024x128xbf16>, vector<8x128xf32> -> vector<8x128xf32>
    %5 = vector.broadcast %3 : vector<1x128xf32> to vector<8x128xf32>
    %6 = arith.addf %4, %5 : vector<8x128xf32>
    %7 = math.tanh %6 : vector<8x128xf32>
    %8 = arith.truncf %7 : vector<8x128xf32> to vector<8x128xbf16>
    %c0_5 = arith.constant 0 : index
    %c0_6 = arith.constant 0 : index
    %9 = vector.load %arg4[%c0_5, %c0_6] : memref<128x128xbf16, #tpu.memory_space<vmem>>, vector<128x128xbf16>
    %c0_7 = arith.constant 0 : index
    %c0_8 = arith.constant 0 : index
    %10 = vector.load %arg5[%c0_7, %c0_8] : memref<1x128xf32, #tpu.memory_space<vmem>>, vector<1x128xf32>
    %cst_9 = arith.constant dense<0.000000e+00> : vector<8x128xf32>
    %11 = tpu.matmul %8, %9, %cst_9 {dimension_numbers = #tpu.dot_dimension_numbers<[1], [0], [0], [1], [0, 0, 1, 1], [], []>} : vector<8x128xbf16>, vector<128x128xbf16>, vector<8x128xf32> -> vector<8x128xf32>
    %12 = vector.broadcast %10 : vector<1x128xf32> to vector<8x128xf32>
    %13 = arith.addf %11, %12 : vector<8x128xf32>
    %14 = math.tanh %13 : vector<8x128xf32>
    %15 = arith.truncf %14 : vector<8x128xf32> to vector<8x128xbf16>
    %c0_10 = arith.constant 0 : index
    %c0_11 = arith.constant 0 : index
    %16 = vector.load %arg6[%c0_10, %c0_11] : memref<128x128xbf16, #tpu.memory_space<vmem>>, vector<128x128xbf16>
    %c0_12 = arith.constant 0 : index
    %c0_13 = arith.constant 0 : index
    %17 = vector.load %arg7[%c0_12, %c0_13] : memref<1x128xf32, #tpu.memory_space<vmem>>, vector<1x128xf32>
    %cst_14 = arith.constant dense<0.000000e+00> : vector<8x128xf32>
    %18 = tpu.matmul %15, %16, %cst_14 {dimension_numbers = #tpu.dot_dimension_numbers<[1], [0], [0], [1], [0, 0, 1, 1], [], []>} : vector<8x128xbf16>, vector<128x128xbf16>, vector<8x128xf32> -> vector<8x128xf32>
    %19 = vector.broadcast %17 : vector<1x128xf32> to vector<8x128xf32>
    %20 = arith.addf %18, %19 : vector<8x128xf32>
    %c0_15 = arith.constant 0 : index
    %c0_16 = arith.constant 0 : index
    %21 = vector.load %arg8[%c0_15, %c0_16] : memref<8x128xf32, #tpu.memory_space<vmem>>, vector<8x128xf32>
    tpu.vector_store %arg8[%c0_15, %c0_16], %20 {strides = array<i32>} : memref<8x128xf32, #tpu.memory_space<vmem>>, vector<8x128xf32>,
    return
  }
  func.func @transform_0(%arg0: i32) -> (i32, i32) {
    %c0_i32 = arith.constant 0 : i32
    %c0_i32_0 = arith.constant 0 : i32
    return %arg0, %c0_i32 : i32, i32
  }
  func.func @transform_1(%arg0: i32) -> (i32, i32) {
    %c0_i32 = arith.constant 0 : i32
    %c0_i32_0 = arith.constant 0 : i32
    %c0_i32_1 = arith.constant 0 : i32
    return %c0_i32, %c0_i32_0 : i32, i32
  }
  func.func @transform_2(%arg0: i32) -> (i32, i32) {
    %c0_i32 = arith.constant 0 : i32
    %c0_i32_0 = arith.constant 0 : i32
    %c0_i32_1 = arith.constant 0 : i32
    return %c0_i32, %c0_i32_0 : i32, i32
  }
  func.func @transform_3(%arg0: i32) -> (i32, i32) {
    %c0_i32 = arith.constant 0 : i32
    %c0_i32_0 = arith.constant 0 : i32
    %c0_i32_1 = arith.constant 0 : i32
    return %c0_i32, %c0_i32_0 : i32, i32
  }
  func.func @transform_4(%arg0: i32) -> (i32, i32) {
    %c0_i32 = arith.constant 0 : i32
    %c0_i32_0 = arith.constant 0 : i32
    %c0_i32_1 = arith.constant 0 : i32
    return %c0_i32, %c0_i32_0 : i32, i32
  }
  func.func @transform_5(%arg0: i32) -> (i32, i32) {
    %c0_i32 = arith.constant 0 : i32
    %c0_i32_0 = arith.constant 0 : i32
    %c0_i32_1 = arith.constant 0 : i32
    return %c0_i32, %c0_i32_0 : i32, i32
  }
  func.func @transform_6(%arg0: i32) -> (i32, i32) {
    %c0_i32 = arith.constant 0 : i32
    %c0_i32_0 = arith.constant 0 : i32
    %c0_i32_1 = arith.constant 0 : i32
    return %c0_i32, %c0_i32_0 : i32, i32
  }
  func.func @transform_7(%arg0: i32) -> (i32, i32) {
    %c0_i32 = arith.constant 0 : i32
    %c0_i32_0 = arith.constant 0 : i32
    return %arg0, %c0_i32 : i32, i32
  }
}

</mosaic_0001>

<bundles_post_ra>
// kernel: tpu_custom_call.1
= control target key start
LH: loop header
LB: loop body
LE: loop exit
PB: predicated region body
PF: predicated region fallthrough
CT: control target
= control target key end

     0   :  { %12 = vsyncpa [#allocation3], 0  ;;  %s1523_s0 = inlined_call_operand.hbm [shape: f32[8,1024], index: 0, kind: input, shape index: {}]   ;;  %s1524_s1 = inlined_call_operand.hbm [shape: bf16[1024,128], index: 1, kind: input, shape index: {}]   ;;  %s1525_s2 = inlined_call_operand.vmem [shape: f32[1,128], index: 2, kind: input, shape index: {}]   ;;  %s1526_s3 = inlined_call_operand.hbm [shape: bf16[128,128], index: 3, kind: input, shape index: {}]   ;;  %s1527_s4 = inlined_call_operand.vmem [shape: f32[1,128], index: 4, kind: input, shape index: {}]   ;;  %s1528_s5 = inlined_call_operand.hbm [shape: bf16[128,128], index: 5, kind: input, shape index: {}]   ;;  %s1529_s6 = inlined_call_operand.vmem [shape: f32[1,128], index: 6, kind: input, shape index: {}]   ;;  %s1530_s7 = inlined_call_operand.hbm [shape: f32[8,128], index: 7, kind: output, shape index: {}]  }
   0x1   :  { %13 = vsyncpa [#allocation6], 0 }
   0x2   :  { %14 = vsyncpa [#allocation9], 0  ;;  %s31_s26 = sshll.u32 %s1524_s1, 4  ;;  %s32_s26 = int_to_ptr.hbm [resolvable:$true] %s31_s26 }
   0x3   :  { %15 = vsyncpa [#allocation4], 0  ;;  %s1452_s27 = smov [#allocation5]   ;;  %s21_s8 = sshll.u32 %s1523_s0, 4  ;;  %s22_s8 = int_to_ptr.hbm [resolvable:$true] %s21_s8 }
   0x4   :  { %s33_s28 = sshll.u32 %s1452_s27, 4  ;;  %s1453_s9 = smov 64   ;;  %s34_s28 = int_to_ptr.vmem [resolvable:$true] %s33_s28 }
   0x5   :  { %s1454_s10 = smov 4   ;;  %s1455_s11 = smov [#allocation2]  }
   0x6   :  { %39 = dma.hbm_to_vmem [thread:$0]  %s32_s26, 8192, %s34_s28, [#allocation6], %s1453_s9, %s1453_s9, %s1454_s10  }
   0x7   :  { %s23_s12 = sshll.u32 %s1455_s11, 4  ;;  %s46_s15 = sshll.u32 %s1526_s3, 4  ;;  %s24_s12 = int_to_ptr.vmem [resolvable:$true] %s23_s12  ;;  %s47_s15 = int_to_ptr.hbm [resolvable:$true] %s46_s15 }
   0x8   :  { %26 = dma.hbm_to_vmem [thread:$0]  %s22_s8, 1024, %s24_s12, [#allocation3]  }
   0x9   :  { %s61_s17 = sshll.u32 %s1528_s5, 4  ;;  %s1456_s18 = smov [#allocation7]   ;;  %s62_s17 = int_to_ptr.hbm [resolvable:$true] %s61_s17 }
   0xa   :  { %s48_s19 = sshll.u32 %s1456_s18, 4  ;;  %s1457_s0 = smov [#allocation8]   ;;  %s49_s19 = int_to_ptr.vmem [resolvable:$true] %s48_s19 }
   0xb   :  { %54 = dma.hbm_to_vmem [thread:$0]  %s47_s15, 1024, %s49_s19, [#allocation6], %s1453_s9, %s1453_s9, %s1454_s10  }
   0xc   :  { %s63_s20 = sshll.u32 %s1457_s0, 4  ;;  %s64_s20 = int_to_ptr.vmem [resolvable:$true] %s63_s20 }
   0xd   :  { %69 = dma.hbm_to_vmem [thread:$0]  %s62_s17, 1024, %s64_s20, [#allocation9], %s1453_s9, %s1453_s9, %s1454_s10  }
   0xe   :  { %1444 = dma.done.wait [#allocation3], 1024  }
   0xf   :  { %1445 = vsyncadd [#allocation3], 4294966272 }
  0x10   :  { %1446 = dma.done.wait [#allocation6], 9216  }
  0x11   :  { %1447 = vsyncadd [#allocation6], 4294958080 }
  0x12   :  { %1448 = dma.done.wait [#allocation9], 1024  }
  0x13   :  { %1449 = vsyncadd [#allocation9], 4294966272  ;;  %v1237_v0 = vld [vmem:[#allocation5 + $0x38] sm:$0xff]  ;;  %v1236_v4 = vld [vmem:[#allocation5 + $0x30] sm:$0xff]  ;;  %s1458_s24 = smov [#allocation10]   ;;  %s898_s28 = sshll.u32 %s1530_s7, 4  ;;  %s899_s28 = int_to_ptr.hbm [resolvable:$true] %s898_s28 }
  0x14   :  { %v1245_v1 = vld [vmem:[#allocation5 + $0x78] sm:$0xff]  ;;  %620 = vmatpush.bf16.msra.mxu0 %v1237_v0  ;;  %v1244_v5 = vld [vmem:[#allocation5 + $0x70] sm:$0xff]  ;;  %v1235_v8 = vld [vmem:[#allocation5 + $0x28] sm:$0xff]  ;;  %s896_s25 = sshll.u32 %s1458_s24, 4  ;;  %s897_s25 = int_to_ptr.vmem [resolvable:$true] %s896_s25 }
  0x15   :  { %v1253_v2 = vld [vmem:[#allocation5 + $0xb8] sm:$0xff]  ;;  %633 = vmatpush.bf16.msra.mxu1 %v1245_v1  ;;  %v1252_v6 = vld [vmem:[#allocation5 + $0xb0] sm:$0xff]  ;;  %v1243_v9 = vld [vmem:[#allocation5 + $0x68] sm:$0xff] }
  0x16   :  { %v1261_v3 = vld [vmem:[#allocation5 + $0xf8] sm:$0xff]  ;;  %646 = vmatpush.bf16.msra.mxu2 %v1253_v2  ;;  %v1260_v7 = vld [vmem:[#allocation5 + $0xf0] sm:$0xff]  ;;  %v1251_v10 = vld [vmem:[#allocation5 + $0xa8] sm:$0xff] }
  0x17   :  { %659 = vmatpush.bf16.msra.mxu3 %v1261_v3  ;;  %v1259_v11 = vld [vmem:[#allocation5 + $0xe8] sm:$0xff]  ;;  %v1234_v12 = vld [vmem:[#allocation5 + $0x20] sm:$0xff]  ;;  %v1233_v16 = vld [vmem:[#allocation5 + $0x18] sm:$0xff] }
  0x18   :  { %621 = vmatpush.bf16.msra.mxu0 %v1236_v4  ;;  %v1242_v13 = vld [vmem:[#allocation5 + $0x60] sm:$0xff]  ;;  %v1241_v17 = vld [vmem:[#allocation5 + $0x58] sm:$0xff]  ;;  %v1232_v20 = vld [vmem:[#allocation5 + $0x10] sm:$0xff] }
  0x19   :  { %634 = vmatpush.bf16.msra.mxu1 %v1244_v5  ;;  %v1250_v14 = vld [vmem:[#allocation5 + $0xa0] sm:$0xff]  ;;  %v1249_v18 = vld [vmem:[#allocation5 + $0x98] sm:$0xff]  ;;  %v1240_v21 = vld [vmem:[#allocation5 + $0x50] sm:$0xff] }
  0x1a   :  { %647 = vmatpush.bf16.msra.mxu2 %v1252_v6  ;;  %v1258_v15 = vld [vmem:[#allocation5 + $0xe0] sm:$0xff]  ;;  %v1257_v19 = vld [vmem:[#allocation5 + $0xd8] sm:$0xff]  ;;  %v1248_v22 = vld [vmem:[#allocation5 + $0x90] sm:$0xff] }
  0x1b   :  { %660 = vmatpush.bf16.msra.mxu3 %v1260_v7  ;;  %v1256_v23 = vld [vmem:[#allocation5 + $0xd0] sm:$0xff]  ;;  %v1231_v24 = vld [vmem:[#allocation5 + $0x8] sm:$0xff]  ;;  %v1230_v28 = vld [vmem:[#allocation5] sm:$0xff] }
  0x1c   :  { %622 = vmatpush.bf16.msra.mxu0 %v1235_v8  ;;  %v1239_v25 = vld [vmem:[#allocation5 + $0x48] sm:$0xff]  ;;  %v1238_v29 = vld [vmem:[#allocation5 + $0x40] sm:$0xff]  ;;  %v1269_v32 = vld [vmem:[#allocation5 + $0x138] sm:$0xff] }
  0x1d   :  { %635 = vmatpush.bf16.msra.mxu1 %v1243_v9  ;;  %v1247_v26 = vld [vmem:[#allocation5 + $0x88] sm:$0xff]  ;;  %v1246_v30 = vld [vmem:[#allocation5 + $0x80] sm:$0xff]  ;;  %v90_v33 = vld [vmem:[#allocation2 + $0x10] sm:$0xff] }
  0x1e   :  { %648 = vmatpush.bf16.msra.mxu2 %v1251_v10  ;;  %v1255_v27 = vld [vmem:[#allocation5 + $0xc8] sm:$0xff]  ;;  %v1254_v31 = vld [vmem:[#allocation5 + $0xc0] sm:$0xff]  ;;  %v1277_v35 = vld [vmem:[#allocation5 + $0x178] sm:$0xff]  ;;  %v98_v40 = vpack.c.bf16 %v90_v33, %v90_v33 }
  0x1f   :  { %661 = vmatpush.bf16.msra.mxu3 %v1259_v11  ;;  %v88_v34 = vld [vmem:[#allocation2] sm:$0xff]  ;;  %v91_v36 = vld [vmem:[#allocation2 + $0x18] sm:$0xff]  ;;  %v89_v37 = vld [vmem:[#allocation2 + $0x8] sm:$0xff] }
  0x20   :  { %623 = vmatpush.bf16.msra.mxu0 %v1234_v12  ;;  %v1285_v38 = vld [vmem:[#allocation5 + $0x1b8] sm:$0xff]  ;;  %v96_v41 = vpack.c.bf16 %v88_v34, %v88_v34  ;;  %v99_v42 = vpack.c.bf16 %v91_v36, %v91_v36  ;;  %v97_v43 = vpack.c.bf16 %v89_v37, %v89_v37  ;;  %v1268_v44 = vld [vmem:[#allocation5 + $0x130] sm:$0xff]  ;;  %v1267_v48 = vld [vmem:[#allocation5 + $0x128] sm:$0xff] }
  0x21   :  { %636 = vmatpush.bf16.msra.mxu1 %v1242_v13  ;;  %v1293_v39 = vld [vmem:[#allocation5 + $0x1f8] sm:$0xff]  ;;  %v1276_v45 = vld [vmem:[#allocation5 + $0x170] sm:$0xff]  ;;  %v1275_v49 = vld [vmem:[#allocation5 + $0x168] sm:$0xff] }
  0x22   :  { %649 = vmatpush.bf16.msra.mxu2 %v1250_v14  ;;  %v1284_v46 = vld [vmem:[#allocation5 + $0x1b0] sm:$0xff]  ;;  %v1283_v50 = vld [vmem:[#allocation5 + $0x1a8] sm:$0xff]  ;;  %v1266_v52 = vld [vmem:[#allocation5 + $0x120] sm:$0xff] }
  0x23   :  { %662 = vmatpush.bf16.msra.mxu3 %v1258_v15  ;;  %v1292_v47 = vld [vmem:[#allocation5 + $0x1f0] sm:$0xff]  ;;  %v1291_v51 = vld [vmem:[#allocation5 + $0x1e8] sm:$0xff]  ;;  %v1274_v53 = vld [vmem:[#allocation5 + $0x160] sm:$0xff] }
  0x24   :  { %624 = vmatpush.bf16.msra.mxu0 %v1233_v16  ;;  %v1282_v54 = vld [vmem:[#allocation5 + $0x1a0] sm:$0xff]  ;;  %v1265_v56 = vld [vmem:[#allocation5 + $0x118] sm:$0xff]  ;;  %v1264_v60 = vld [vmem:[#allocation5 + $0x110] sm:$0xff] }
  0x25   :  { %637 = vmatpush.bf16.msra.mxu1 %v1241_v17  ;;  %v1290_v55 = vld [vmem:[#allocation5 + $0x1e0] sm:$0xff]  ;;  %v1273_v57 = vld [vmem:[#allocation5 + $0x158] sm:$0xff]  ;;  %v1272_v61 = vld [vmem:[#allocation5 + $0x150] sm:$0xff] }
  0x26   :  { %650 = vmatpush.bf16.msra.mxu2 %v1249_v18  ;;  %v1281_v58 = vld [vmem:[#allocation5 + $0x198] sm:$0xff]  ;;  %v1280_v62 = vld [vmem:[#allocation5 + $0x190] sm:$0xff]  ;;  %v1263_v0 = vld [vmem:[#allocation5 + $0x108] sm:$0xff] }
  0x27   :  { %663 = vmatpush.bf16.msra.mxu3 %v1257_v19  ;;  %v1289_v59 = vld [vmem:[#allocation5 + $0x1d8] sm:$0xff]  ;;  %v1288_v63 = vld [vmem:[#allocation5 + $0x1d0] sm:$0xff]  ;;  %v1271_v1 = vld [vmem:[#allocation5 + $0x148] sm:$0xff] }
  0x28   :  { %625 = vmatpush.bf16.msra.mxu0 %v1232_v20  ;;  %v1279_v2 = vld [vmem:[#allocation5 + $0x188] sm:$0xff]  ;;  %v1262_v4 = vld [vmem:[#allocation5 + $0x100] sm:$0xff]  ;;  %v94_v10 = vld [vmem:[#allocation2 + $0x30] sm:$0xff] }
  0x29   :  { %638 = vmatpush.bf16.msra.mxu1 %v1240_v21  ;;  %v1287_v3 = vld [vmem:[#allocation5 + $0x1c8] sm:$0xff]  ;;  %v1270_v5 = vld [vmem:[#allocation5 + $0x140] sm:$0xff]  ;;  %v95_v11 = vld [vmem:[#allocation2 + $0x38] sm:$0xff]  ;;  %v102_v14 = vpack.c.bf16 %v94_v10, %v94_v10 }
  0x2a   :  { %651 = vmatpush.bf16.msra.mxu2 %v1248_v22  ;;  %v1278_v6 = vld [vmem:[#allocation5 + $0x180] sm:$0xff]  ;;  %v93_v8 = vld [vmem:[#allocation2 + $0x28] sm:$0xff]  ;;  %v103_v15 = vpack.c.bf16 %v95_v11, %v95_v11  ;;  %v1301_v16 = vld [vmem:[#allocation7 + $0x38] sm:$0xff] }
  0x2b   :  { %664 = vmatpush.bf16.msra.mxu3 %v1256_v23  ;;  %v92_v7 = vld [vmem:[#allocation2 + $0x20] sm:$0xff]  ;;  %v101_v13 = vpack.c.bf16 %v93_v8, %v93_v8  ;;  %v1300_v17 = vld [vmem:[#allocation7 + $0x30] sm:$0xff]  ;;  %v1299_v18 = vld [vmem:[#allocation7 + $0x28] sm:$0xff] }
  0x2c   :  { %626 = vmatpush.bf16.msra.mxu0 %v1231_v24  ;;  %v1286_v9 = vld [vmem:[#allocation5 + $0x1c0] sm:$0xff]  ;;  %v100_v12 = vpack.c.bf16 %v92_v7, %v92_v7  ;;  %v1297_v21 = vld [vmem:[#allocation7 + $0x18] sm:$0xff]  ;;  %v1296_v23 = vld [vmem:[#allocation7 + $0x10] sm:$0xff] }
  0x2d   :  { %639 = vmatpush.bf16.msra.mxu1 %v1239_v25  ;;  %v1298_v19 = vld [vmem:[#allocation7 + $0x20] sm:$0xff]  ;;  %v1309_v34 = vld [vmem:[#allocation8 + $0x38] sm:$0xff]  ;;  %v1307_v37 = vld [vmem:[#allocation8 + $0x28] sm:$0xff] }
  0x2e   :  { %652 = vmatpush.bf16.msra.mxu2 %v1247_v26 }
  0x2f   :  { %665 = vmatpush.bf16.msra.mxu3 %v1255_v27 }
  0x30   :  { %627 = vmatpush.bf16.msra.mxu0 %v1230_v28  ;;  %v1295_v28 = vld [vmem:[#allocation7 + $0x8] sm:$0xff] }
  0x31   :  { %640 = vmatpush.bf16.msra.mxu1 %v1238_v29  ;;  %v1317_v29 = vld [vmem:[%s1525_s2] ss:$0 sm:$0xff] }
  0x32   :  { %653 = vmatpush.bf16.msra.mxu2 %v1246_v30  ;;  %v1294_v30 = vld [vmem:[#allocation7] sm:$0xff] }
  0x33   :  { %666 = vmatpush.bf16.msra.mxu3 %v1254_v31  ;;  %628 = vmatmul.bf16.vlgmr.msra.gmra.mxu0 %v96_v41 }
  0x34   :  { %672 = vmatpush.bf16.msrb.mxu0 %v1269_v32  ;;  %641 = vmatmul.bf16.vlgmr.msra.gmra.mxu1 %v97_v43 }
  0x35   :  { %685 = vmatpush.bf16.msrb.mxu1 %v1277_v35  ;;  %654 = vmatmul.bf16.vlgmr.msra.gmra.mxu2 %v98_v40  ;;  %v1308_v35 = vld [vmem:[#allocation8 + $0x30] sm:$0xff] }
  0x36   :  { %698 = vmatpush.bf16.msrb.mxu2 %v1285_v38  ;;  %667 = vmatmul.bf16.vlgmr.msra.gmra.mxu3 %v99_v42 }
  0x37   :  { %711 = vmatpush.bf16.msrb.mxu3 %v1293_v39  ;;  %v1306_v39 = vld [vmem:[#allocation8 + $0x20] sm:$0xff] }
  0x38   :  { %673 = vmatpush.bf16.msrb.mxu0 %v1268_v44  ;;  %v1305_v44 = vld [vmem:[#allocation8 + $0x18] sm:$0xff] }
  0x39   :  { %686 = vmatpush.bf16.msrb.mxu1 %v1276_v45 }
  0x3a   :  { %699 = vmatpush.bf16.msrb.mxu2 %v1284_v46 }
  0x3b   :  { %712 = vmatpush.bf16.msrb.mxu3 %v1292_v47 }
  0x3c   :  { %674 = vmatpush.bf16.msrb.mxu0 %v1267_v48 }
  0x3d   :  { %687 = vmatpush.bf16.msrb.mxu1 %v1275_v49 }
  0x3e   :  { %700 = vmatpush.bf16.msrb.mxu2 %v1283_v50 }
  0x3f   :  { %713 = vmatpush.bf16.msrb.mxu3 %v1291_v51 }
  0x40   :  { %675 = vmatpush.bf16.msrb.mxu0 %v1266_v52 }
  0x41   :  { %688 = vmatpush.bf16.msrb.mxu1 %v1274_v53 }
  0x42   :  { %701 = vmatpush.bf16.msrb.mxu2 %v1282_v54 }
  0x43   :  { %714 = vmatpush.bf16.msrb.mxu3 %v1290_v55 }
  0x44   :  { %676 = vmatpush.bf16.msrb.mxu0 %v1265_v56  ;;  %v1304_v56 = vld [vmem:[#allocation8 + $0x10] sm:$0xff] }
  0x45   :  { %689 = vmatpush.bf16.msrb.mxu1 %v1273_v57  ;;  %v1303_v57 = vld [vmem:[#allocation8 + $0x8] sm:$0xff] }
  0x46   :  { %702 = vmatpush.bf16.msrb.mxu2 %v1281_v58  ;;  %v1302_v58 = vld [vmem:[#allocation8] sm:$0xff] }
  0x47   :  { %715 = vmatpush.bf16.msrb.mxu3 %v1289_v59  ;;  %v1318_v59 = vld [vmem:[%s1527_s4] ss:$0 sm:$0xff] }
  0x48   :  { %677 = vmatpush.bf16.msrb.mxu0 %v1264_v60 }
  0x49   :  { %690 = vmatpush.bf16.msrb.mxu1 %v1272_v61 }
  0x4a   :  { %703 = vmatpush.bf16.msrb.mxu2 %v1280_v62 }
  0x4b   :  { %716 = vmatpush.bf16.msrb.mxu3 %v1288_v63 }
  0x4c   :  { %678 = vmatpush.bf16.msrb.mxu0 %v1263_v0 }
  0x4d   :  { %691 = vmatpush.bf16.msrb.mxu1 %v1271_v1  ;;  %v1319_v1 = vld [vmem:[%s1529_s6] ss:$0 sm:$0xff] }
  0x4e   :  { %704 = vmatpush.bf16.msrb.mxu2 %v1279_v2 }
  0x4f   :  { %717 = vmatpush.bf16.msrb.mxu3 %v1287_v3 }
  0x50   :  { %679 = vmatpush.bf16.msrb.mxu0 %v1262_v4 }
  0x51   :  { %692 = vmatpush.bf16.msrb.mxu1 %v1270_v5 }
  0x52   :  { %705 = vmatpush.bf16.msrb.mxu2 %v1278_v6 }
  0x53   :  { %718 = vmatpush.bf16.msrb.mxu3 %v1286_v9  ;;  %680 = vmatmul.bf16.vlgmr.msrb.gmra.mxu0 %v100_v12 }
  0x54   :  { %693 = vmatmul.bf16.vlgmr.msrb.gmra.mxu1 %v101_v13  ;;  %794 = vmatpush.bf16.msra.mxu0 %v1301_v16 }
  0x55   :  { %706 = vmatmul.bf16.vlgmr.msrb.gmra.mxu2 %v102_v14  ;;  %877 = vmatpush.bf16.msra.mxu1 %v1309_v34 }
  0x56   :  { %719 = vmatmul.bf16.vlgmr.msrb.gmra.mxu3 %v103_v15 }
  0x58   :  { %795 = vmatpush.bf16.msra.mxu0 %v1300_v17 }
  0x59   :  { %878 = vmatpush.bf16.msra.mxu1 %v1308_v35 }
  0x5c   :  { %796 = vmatpush.bf16.msra.mxu0 %v1299_v18 }
  0x5d   :  { %879 = vmatpush.bf16.msra.mxu1 %v1307_v37 }
  0x60   :  { %797 = vmatpush.bf16.msra.mxu0 %v1298_v19 }
  0x61   :  { %880 = vmatpush.bf16.msra.mxu1 %v1306_v39 }
  0x64   :  { %798 = vmatpush.bf16.msra.mxu0 %v1297_v21 }
  0x65   :  { %881 = vmatpush.bf16.msra.mxu1 %v1305_v44 }
  0x68   :  { %799 = vmatpush.bf16.msra.mxu0 %v1296_v23 }
  0x69   :  { %882 = vmatpush.bf16.msra.mxu1 %v1304_v56 }
  0x6c   :  { %800 = vmatpush.bf16.msra.mxu0 %v1295_v28 }
  0x6d   :  { %883 = vmatpush.bf16.msra.mxu1 %v1303_v57 }
  0x70   :  { %801 = vmatpush.bf16.msra.mxu0 %v1294_v30 }
  0x71   :  { %884 = vmatpush.bf16.msra.mxu1 %v1302_v58 }
  0xb0   :  { %v629_v20 = vpop.f32.mrf.mxu0 }
  0xb1   :  { %v642_v22 = vpop.f32.mrf.mxu1  ;;  %v630_v33 = vadd.f32 %v1317_v29, %v629_v20 }
  0xb3   :  { %v643_v36 = vadd.f32 %v642_v22, %v630_v33 }
  0xb8   :  { %v655_v24 = vpop.f32.mrf.mxu2  ;;  %v631_v26 = vpop.f32.mrf.mxu0 }
  0xb9   :  { %v668_v25 = vpop.f32.mrf.mxu3  ;;  %v644_v27 = vpop.f32.mrf.mxu1  ;;  %v656_v38 = vadd.f32 %v655_v24, %v643_v36 }
  0xbb   :  { %v669_v40 = vadd.f32 %v668_v25, %v656_v38 }
  0xc0   :  { %v657_v31 = vpop.f32.mrf.mxu2 }
  0xc1   :  { %v670_v32 = vpop.f32.mrf.mxu3 }
  0xd0   :  { %v681_v41 = vpop.f32.mrf.mxu0 }
  0xd1   :  { %v694_v42 = vpop.f32.mrf.mxu1  ;;  %v682_v43 = vadd.f32 %v681_v41, %v669_v40 }
  0xd3   :  { %v695_v45 = vadd.f32 %v694_v42, %v682_v43 }
  0xd8   :  { %v707_v46 = vpop.f32.mrf.mxu2  ;;  %v683_v49 = vpop.f32.mrf.mxu0 }
  0xd9   :  { %v720_v47 = vpop.f32.mrf.mxu3  ;;  %v708_v48 = vadd.f32 %v707_v46, %v695_v45  ;;  %v696_v50 = vpop.f32.mrf.mxu1 }
  0xdb   :  { %v721_v51 = vadd.f32 %v720_v47, %v708_v48 }
  0xdd   :  { %1320 = vtanh.f32 %v721_v51 }
  0xe0   :  { %v709_v52 = vpop.f32.mrf.mxu2 }
  0xe1   :  { %v722_v53 = vpop.f32.mrf.mxu3 }
  0xe3   :  { %v1321_v54 = vpop.eup %1320 }
  0xe4   :  { %v725_v55 = vpack.c.bf16 %v1321_v54, %v1321_v54 }
  0xe6   :  { %802 = vmatmul.bf16.vlgmr.msra.gmra.mxu0 %v725_v55 }
 0x163   :  { %v803_v60 = vpop.f32.mrf.mxu0 }
 0x164   :  { %v804_v61 = vadd.f32 %v1318_v59, %v803_v60 }
 0x166   :  { %1322 = vtanh.f32 %v804_v61 }
 0x16b   :  { %v805_v62 = vpop.f32.mrf.mxu0 }
 0x16c   :  { %v1323_v63 = vpop.eup %1322 }
 0x16d   :  { %v808_v0 = vpack.c.bf16 %v1323_v63, %v1323_v63 }
 0x16f   :  { %885 = vmatmul.bf16.vlgmr.msra.gmra.mxu1 %v808_v0 }
 0x1ec   :  { %v886_v2 = vpop.f32.mrf.mxu1 }
 0x1ed   :  { %v887_v3 = vadd.f32 %v1319_v1, %v886_v2 }
 0x1ef   :  { %890 = vst [vmem:[#allocation10] sm:$0xff] %v887_v3 }
 0x1f0   :  { %901 = dma.vmem_to_hbm [thread:$0]  %s897_s25, 128, %s899_s28, [#allocation4]  }
 0x1f4   :  { %v888_v4 = vpop.f32.mrf.mxu1 }
 0x1f5   :  { %1450 = dma.done.wait [#allocation4], 128  }
 0x1f6   :  { %1451 = vsyncadd [#allocation4], 4294967168 }
 0x1f7   :  { %906 = vsyncpa [#allocation3], 1 }
 0x1f8   :  { %907 = vsyncpa [#allocation6], 1 }
 0x1f9   :  { %908 = vsyncpa [#allocation9], 1 }
 0x1fa   :  { %909 = vsyncpa [#allocation4], 1 }

// kernel: tpu_custom_call.1
= control target key start
LH: loop header
LB: loop body
LE: loop exit
PB: predicated region body
PF: predicated region fallthrough
CT: control target
= control target key end

     0   :  { %12 = vsyncpa [#allocation3], 0  ;;  %s1523_s0 = inlined_call_operand.hbm [shape: f32[8,1024], index: 0, kind: input, shape index: {}]   ;;  %s1524_s1 = inlined_call_operand.hbm [shape: bf16[1024,128], index: 1, kind: input, shape index: {}]   ;;  %s1525_s2 = inlined_call_operand.vmem [shape: f32[1,128], index: 2, kind: input, shape index: {}]   ;;  %s1526_s3 = inlined_call_operand.hbm [shape: bf16[128,128], index: 3, kind: input, shape index: {}]   ;;  %s1527_s4 = inlined_call_operand.vmem [shape: f32[1,128], index: 4, kind: input, shape index: {}]   ;;  %s1528_s5 = inlined_call_operand.hbm [shape: bf16[128,128], index: 5, kind: input, shape index: {}]   ;;  %s1529_s6 = inlined_call_operand.vmem [shape: f32[1,128], index: 6, kind: input, shape index: {}]   ;;  %s1530_s7 = inlined_call_operand.hbm [shape: f32[8,128], index: 7, kind: output, shape index: {}]  }
   0x1   :  { %13 = vsyncpa [#allocation6], 0 }
   0x2   :  { %14 = vsyncpa [#allocation9], 0  ;;  %s31_s26 = sshll.u32 %s1524_s1, 4  ;;  %s32_s26 = int_to_ptr.hbm [resolvable:$true] %s31_s26 }
   0x3   :  { %15 = vsyncpa [#allocation4], 0  ;;  %s1452_s27 = smov [#allocation5]   ;;  %s21_s8 = sshll.u32 %s1523_s0, 4  ;;  %s22_s8 = int_to_ptr.hbm [resolvable:$true] %s21_s8 }
   0x4   :  { %s33_s28 = sshll.u32 %s1452_s27, 4  ;;  %s1453_s9 = smov 64   ;;  %s34_s28 = int_to_ptr.vmem [resolvable:$true] %s33_s28 }
   0x5   :  { %s1454_s10 = smov 4   ;;  %s1455_s11 = smov [#allocation2]  }
   0x6   :  { %39 = dma.hbm_to_vmem [thread:$0]  %s32_s26, 8192, %s34_s28, [#allocation6], %s1453_s9, %s1453_s9, %s1454_s10  }
   0x7   :  { %s23_s12 = sshll.u32 %s1455_s11, 4  ;;  %s46_s15 = sshll.u32 %s1526_s3, 4  ;;  %s24_s12 = int_to_ptr.vmem [resolvable:$true] %s23_s12  ;;  %s47_s15 = int_to_ptr.hbm [resolvable:$true] %s46_s15 }
   0x8   :  { %26 = dma.hbm_to_vmem [thread:$0]  %s22_s8, 1024, %s24_s12, [#allocation3]  }
   0x9   :  { %s61_s17 = sshll.u32 %s1528_s5, 4  ;;  %s1456_s18 = smov [#allocation7]   ;;  %s62_s17 = int_to_ptr.hbm [resolvable:$true] %s61_s17 }
   0xa   :  { %s48_s19 = sshll.u32 %s1456_s18, 4  ;;  %s1457_s0 = smov [#allocation8]   ;;  %s49_s19 = int_to_ptr.vmem [resolvable:$true] %s48_s19 }
   0xb   :  { %54 = dma.hbm_to_vmem [thread:$0]  %s47_s15, 1024, %s49_s19, [#allocation6], %s1453_s9, %s1453_s9, %s1454_s10  }
   0xc   :  { %s63_s20 = sshll.u32 %s1457_s0, 4  ;;  %s64_s20 = int_to_ptr.vmem [resolvable:$true] %s63_s20 }
   0xd   :  { %69 = dma.hbm_to_vmem [thread:$0]  %s62_s17, 1024, %s64_s20, [#allocation9], %s1453_s9, %s1453_s9, %s1454_s10  }
   0xe   :  { %1444 = dma.done.wait [#allocation3], 1024  }
   0xf   :  { %1445 = vsyncadd [#allocation3], 4294966272 }
  0x10   :  { %1446 = dma.done.wait [#allocation6], 9216  }
  0x11   :  { %1447 = vsyncadd [#allocation6], 4294958080 }
  0x12   :  { %1448 = dma.done.wait [#allocation9], 1024  }
  0x13   :  { %1449 = vsyncadd [#allocation9], 4294966272  ;;  %v1237_v0 = vld [vmem:[#allocation5 + $0x38] sm:$0xff]  ;;  %v1236_v4 = vld [vmem:[#allocation5 + $0x30] sm:$0xff]  ;;  %s1458_s24 = smov [#allocation10]   ;;  %s898_s28 = sshll.u32 %s1530_s7, 4  ;;  %s899_s28 = int_to_ptr.hbm [resolvable:$true] %s898_s28 }
  0x14   :  { %v1245_v1 = vld [vmem:[#allocation5 + $0x78] sm:$0xff]  ;;  %620 = vmatpush.bf16.msra.mxu0 %v1237_v0  ;;  %v1244_v5 = vld [vmem:[#allocation5 + $0x70] sm:$0xff]  ;;  %v1235_v8 = vld [vmem:[#allocation5 + $0x28] sm:$0xff]  ;;  %s896_s25 = sshll.u32 %s1458_s24, 4  ;;  %s897_s25 = int_to_ptr.vmem [resolvable:$true] %s896_s25 }
  0x15   :  { %v1253_v2 = vld [vmem:[#allocation5 + $0xb8] sm:$0xff]  ;;  %633 = vmatpush.bf16.msra.mxu1 %v1245_v1  ;;  %v1252_v6 = vld [vmem:[#allocation5 + $0xb0] sm:$0xff]  ;;  %v1243_v9 = vld [vmem:[#allocation5 + $0x68] sm:$0xff] }
  0x16   :  { %v1261_v3 = vld [vmem:[#allocation5 + $0xf8] sm:$0xff]  ;;  %646 = vmatpush.bf16.msra.mxu2 %v1253_v2  ;;  %v1260_v7 = vld [vmem:[#allocation5 + $0xf0] sm:$0xff]  ;;  %v1251_v10 = vld [vmem:[#allocation5 + $0xa8] sm:$0xff] }
  0x17   :  { %659 = vmatpush.bf16.msra.mxu3 %v1261_v3  ;;  %v1259_v11 = vld [vmem:[#allocation5 + $0xe8] sm:$0xff]  ;;  %v1234_v12 = vld [vmem:[#allocation5 + $0x20] sm:$0xff]  ;;  %v1233_v16 = vld [vmem:[#allocation5 + $0x18] sm:$0xff] }
  0x18   :  { %621 = vmatpush.bf16.msra.mxu0 %v1236_v4  ;;  %v1242_v13 = vld [vmem:[#allocation5 + $0x60] sm:$0xff]  ;;  %v1241_v17 = vld [vmem:[#allocation5 + $0x58] sm:$0xff]  ;;  %v1232_v20 = vld [vmem:[#allocation5 + $0x10] sm:$0xff] }
  0x19   :  { %634 = vmatpush.bf16.msra.mxu1 %v1244_v5  ;;  %v1250_v14 = vld [vmem:[#allocation5 + $0xa0] sm:$0xff]  ;;  %v1249_v18 = vld [vmem:[#allocation5 + $0x98] sm:$0xff]  ;;  %v1240_v21 = vld [vmem:[#allocation5 + $0x50] sm:$0xff] }
  0x1a   :  { %647 = vmatpush.bf16.msra.mxu2 %v1252_v6  ;;  %v1258_v15 = vld [vmem:[#allocation5 + $0xe0] sm:$0xff]  ;;  %v1257_v19 = vld [vmem:[#allocation5 + $0xd8] sm:$0xff]  ;;  %v1248_v22 = vld [vmem:[#allocation5 + $0x90] sm:$0xff] }
  0x1b   :  { %660 = vmatpush.bf16.msra.mxu3 %v1260_v7  ;;  %v1256_v23 = vld [vmem:[#allocation5 + $0xd0] sm:$0xff]  ;;  %v1231_v24 = vld [vmem:[#allocation5 + $0x8] sm:$0xff]  ;;  %v1230_v28 = vld [vmem:[#allocation5] sm:$0xff] }
  0x1c   :  { %622 = vmatpush.bf16.msra.mxu0 %v1235_v8  ;;  %v1239_v25 = vld [vmem:[#allocation5 + $0x48] sm:$0xff]  ;;  %v1238_v29 = vld [vmem:[#allocation5 + $0x40] sm:$0xff]  ;;  %v1269_v32 = vld [vmem:[#allocation5 + $0x138] sm:$0xff] }
  0x1d   :  { %635 = vmatpush.bf16.msra.mxu1 %v1243_v9  ;;  %v1247_v26 = vld [vmem:[#allocation5 + $0x88] sm:$0xff]  ;;  %v1246_v30 = vld [vmem:[#allocation5 + $0x80] sm:$0xff]  ;;  %v90_v33 = vld [vmem:[#allocation2 + $0x10] sm:$0xff] }
  0x1e   :  { %648 = vmatpush.bf16.msra.mxu2 %v1251_v10  ;;  %v1255_v27 = vld [vmem:[#allocation5 + $0xc8] sm:$0xff]  ;;  %v1254_v31 = vld [vmem:[#allocation5 + $0xc0] sm:$0xff]  ;;  %v1277_v35 = vld [vmem:[#allocation5 + $0x178] sm:$0xff]  ;;  %v98_v40 = vpack.c.bf16 %v90_v33, %v90_v33 }
  0x1f   :  { %661 = vmatpush.bf16.msra.mxu3 %v1259_v11  ;;  %v88_v34 = vld [vmem:[#allocation2] sm:$0xff]  ;;  %v91_v36 = vld [vmem:[#allocation2 + $0x18] sm:$0xff]  ;;  %v89_v37 = vld [vmem:[#allocation2 + $0x8] sm:$0xff] }
  0x20   :  { %623 = vmatpush.bf16.msra.mxu0 %v1234_v12  ;;  %v1285_v38 = vld [vmem:[#allocation5 + $0x1b8] sm:$0xff]  ;;  %v96_v41 = vpack.c.bf16 %v88_v34, %v88_v34  ;;  %v99_v42 = vpack.c.bf16 %v91_v36, %v91_v36  ;;  %v97_v43 = vpack.c.bf16 %v89_v37, %v89_v37  ;;  %v1268_v44 = vld [vmem:[#allocation5 + $0x130] sm:$0xff]  ;;  %v1267_v48 = vld [vmem:[#allocation5 + $0x128] sm:$0xff] }
  0x21   :  { %636 = vmatpush.bf16.msra.mxu1 %v1242_v13  ;;  %v1293_v39 = vld [vmem:[#allocation5 + $0x1f8] sm:$0xff]  ;;  %v1276_v45 = vld [vmem:[#allocation5 + $0x170] sm:$0xff]  ;;  %v1275_v49 = vld [vmem:[#allocation5 + $0x168] sm:$0xff] }
  0x22   :  { %649 = vmatpush.bf16.msra.mxu2 %v1250_v14  ;;  %v1284_v46 = vld [vmem:[#allocation5 + $0x1b0] sm:$0xff]  ;;  %v1283_v50 = vld [vmem:[#allocation5 + $0x1a8] sm:$0xff]  ;;  %v1266_v52 = vld [vmem:[#allocation5 + $0x120] sm:$0xff] }
  0x23   :  { %662 = vmatpush.bf16.msra.mxu3 %v1258_v15  ;;  %v1292_v47 = vld [vmem:[#allocation5 + $0x1f0] sm:$0xff]  ;;  %v1291_v51 = vld [vmem:[#allocation5 + $0x1e8] sm:$0xff]  ;;  %v1274_v53 = vld [vmem:[#allocation5 + $0x160] sm:$0xff] }
  0x24   :  { %624 = vmatpush.bf16.msra.mxu0 %v1233_v16  ;;  %v1282_v54 = vld [vmem:[#allocation5 + $0x1a0] sm:$0xff]  ;;  %v1265_v56 = vld [vmem:[#allocation5 + $0x118] sm:$0xff]  ;;  %v1264_v60 = vld [vmem:[#allocation5 + $0x110] sm:$0xff] }
  0x25   :  { %637 = vmatpush.bf16.msra.mxu1 %v1241_v17  ;;  %v1290_v55 = vld [vmem:[#allocation5 + $0x1e0] sm:$0xff]  ;;  %v1273_v57 = vld [vmem:[#allocation5 + $0x158] sm:$0xff]  ;;  %v1272_v61 = vld [vmem:[#allocation5 + $0x150] sm:$0xff] }
  0x26   :  { %650 = vmatpush.bf16.msra.mxu2 %v1249_v18  ;;  %v1281_v58 = vld [vmem:[#allocation5 + $0x198] sm:$0xff]  ;;  %v1280_v62 = vld [vmem:[#allocation5 + $0x190] sm:$0xff]  ;;  %v1263_v0 = vld [vmem:[#allocation5 + $0x108] sm:$0xff] }
  0x27   :  { %663 = vmatpush.bf16.msra.mxu3 %v1257_v19  ;;  %v1289_v59 = vld [vmem:[#allocation5 + $0x1d8] sm:$0xff]  ;;  %v1288_v63 = vld [vmem:[#allocation5 + $0x1d0] sm:$0xff]  ;;  %v1271_v1 = vld [vmem:[#allocation5 + $0x148] sm:$0xff] }
  0x28   :  { %625 = vmatpush.bf16.msra.mxu0 %v1232_v20  ;;  %v1279_v2 = vld [vmem:[#allocation5 + $0x188] sm:$0xff]  ;;  %v1262_v4 = vld [vmem:[#allocation5 + $0x100] sm:$0xff]  ;;  %v94_v10 = vld [vmem:[#allocation2 + $0x30] sm:$0xff] }
  0x29   :  { %638 = vmatpush.bf16.msra.mxu1 %v1240_v21  ;;  %v1287_v3 = vld [vmem:[#allocation5 + $0x1c8] sm:$0xff]  ;;  %v1270_v5 = vld [vmem:[#allocation5 + $0x140] sm:$0xff]  ;;  %v95_v11 = vld [vmem:[#allocation2 + $0x38] sm:$0xff]  ;;  %v102_v14 = vpack.c.bf16 %v94_v10, %v94_v10 }
  0x2a   :  { %651 = vmatpush.bf16.msra.mxu2 %v1248_v22  ;;  %v1278_v6 = vld [vmem:[#allocation5 + $0x180] sm:$0xff]  ;;  %v93_v8 = vld [vmem:[#allocation2 + $0x28] sm:$0xff]  ;;  %v103_v15 = vpack.c.bf16 %v95_v11, %v95_v11  ;;  %v1301_v16 = vld [vmem:[#allocation7 + $0x38] sm:$0xff] }
  0x2b   :  { %664 = vmatpush.bf16.msra.mxu3 %v1256_v23  ;;  %v92_v7 = vld [vmem:[#allocation2 + $0x20] sm:$0xff]  ;;  %v101_v13 = vpack.c.bf16 %v93_v8, %v93_v8  ;;  %v1300_v17 = vld [vmem:[#allocation7 + $0x30] sm:$0xff]  ;;  %v1299_v18 = vld [vmem:[#allocation7 + $0x28] sm:$0xff] }
  0x2c   :  { %626 = vmatpush.bf16.msra.mxu0 %v1231_v24  ;;  %v1286_v9 = vld [vmem:[#allocation5 + $0x1c0] sm:$0xff]  ;;  %v100_v12 = vpack.c.bf16 %v92_v7, %v92_v7  ;;  %v1297_v21 = vld [vmem:[#allocation7 + $0x18] sm:$0xff]  ;;  %v1296_v23 = vld [vmem:[#allocation7 + $0x10] sm:$0xff] }
  0x2d   :  { %639 = vmatpush.bf16.msra.mxu1 %v1239_v25  ;;  %v1298_v19 = vld [vmem:[#allocation7 + $0x20] sm:$0xff]  ;;  %v1309_v34 = vld [vmem:[#allocation8 + $0x38] sm:$0xff]  ;;  %v1307_v37 = vld [vmem:[#allocation8 + $0x28] sm:$0xff] }
  0x2e   :  { %652 = vmatpush.bf16.msra.mxu2 %v1247_v26 }
  0x2f   :  { %665 = vmatpush.bf16.msra.mxu3 %v1255_v27 }
  0x30   :  { %627 = vmatpush.bf16.msra.mxu0 %v1230_v28  ;;  %v1295_v28 = vld [vmem:[#allocation7 + $0x8] sm:$0xff] }
  0x31   :  { %640 = vmatpush.bf16.msra.mxu1 %v1238_v29  ;;  %v1317_v29 = vld [vmem:[%s1525_s2] ss:$0 sm:$0xff] }
  0x32   :  { %653 = vmatpush.bf16.msra.mxu2 %v1246_v30  ;;  %v1294_v30 = vld [vmem:[#allocation7] sm:$0xff] }
  0x33   :  { %666 = vmatpush.bf16.msra.mxu3 %v1254_v31  ;;  %628 = vmatmul.bf16.vlgmr.msra.gmra.mxu0 %v96_v41 }
  0x34   :  { %672 = vmatpush.bf16.msrb.mxu0 %v1269_v32  ;;  %641 = vmatmul.bf16.vlgmr.msra.gmra.mxu1 %v97_v43 }
  0x35   :  { %685 = vmatpush.bf16.msrb.mxu1 %v1277_v35  ;;  %654 = vmatmul.bf16.vlgmr.msra.gmra.mxu2 %v98_v40  ;;  %v1308_v35 = vld [vmem:[#allocation8 + $0x30] sm:$0xff] }
  0x36   :  { %698 = vmatpush.bf16.msrb.mxu2 %v1285_v38  ;;  %667 = vmatmul.bf16.vlgmr.msra.gmra.mxu3 %v99_v42 }
  0x37   :  { %711 = vmatpush.bf16.msrb.mxu3 %v1293_v39  ;;  %v1306_v39 = vld [vmem:[#allocation8 + $0x20] sm:$0xff] }
  0x38   :  { %673 = vmatpush.bf16.msrb.mxu0 %v1268_v44  ;;  %v1305_v44 = vld [vmem:[#allocation8 + $0x18] sm:$0xff] }
  0x39   :  { %686 = vmatpush.bf16.msrb.mxu1 %v1276_v45 }
  0x3a   :  { %699 = vmatpush.bf16.msrb.mxu2 %v1284_v46 }
  0x3b   :  { %712 = vmatpush.bf16.msrb.mxu3 %v1292_v47 }
  0x3c   :  { %674 = vmatpush.bf16.msrb.mxu0 %v1267_v48 }
  0x3d   :  { %687 = vmatpush.bf16.msrb.mxu1 %v1275_v49 }
  0x3e   :  { %700 = vmatpush.bf16.msrb.mxu2 %v1283_v50 }
  0x3f   :  { %713 = vmatpush.bf16.msrb.mxu3 %v1291_v51 }
  0x40   :  { %675 = vmatpush.bf16.msrb.mxu0 %v1266_v52 }
  0x41   :  { %688 = vmatpush.bf16.msrb.mxu1 %v1274_v53 }
  0x42   :  { %701 = vmatpush.bf16.msrb.mxu2 %v1282_v54 }
  0x43   :  { %714 = vmatpush.bf16.msrb.mxu3 %v1290_v55 }
  0x44   :  { %676 = vmatpush.bf16.msrb.mxu0 %v1265_v56  ;;  %v1304_v56 = vld [vmem:[#allocation8 + $0x10] sm:$0xff] }
  0x45   :  { %689 = vmatpush.bf16.msrb.mxu1 %v1273_v57  ;;  %v1303_v57 = vld [vmem:[#allocation8 + $0x8] sm:$0xff] }
  0x46   :  { %702 = vmatpush.bf16.msrb.mxu2 %v1281_v58  ;;  %v1302_v58 = vld [vmem:[#allocation8] sm:$0xff] }
  0x47   :  { %715 = vmatpush.bf16.msrb.mxu3 %v1289_v59  ;;  %v1318_v59 = vld [vmem:[%s1527_s4] ss:$0 sm:$0xff] }
  0x48   :  { %677 = vmatpush.bf16.msrb.mxu0 %v1264_v60 }
  0x49   :  { %690 = vmatpush.bf16.msrb.mxu1 %v1272_v61 }
  0x4a   :  { %703 = vmatpush.bf16.msrb.mxu2 %v1280_v62 }
  0x4b   :  { %716 = vmatpush.bf16.msrb.mxu3 %v1288_v63 }
  0x4c   :  { %678 = vmatpush.bf16.msrb.mxu0 %v1263_v0 }
  0x4d   :  { %691 = vmatpush.bf16.msrb.mxu1 %v1271_v1  ;;  %v1319_v1 = vld [vmem:[%s1529_s6] ss:$0 sm:$0xff] }
  0x4e   :  { %704 = vmatpush.bf16.msrb.mxu2 %v1279_v2 }
  0x4f   :  { %717 = vmatpush.bf16.msrb.mxu3 %v1287_v3 }
  0x50   :  { %679 = vmatpush.bf16.msrb.mxu0 %v1262_v4 }
  0x51   :  { %692 = vmatpush.bf16.msrb.mxu1 %v1270_v5 }
  0x52   :  { %705 = vmatpush.bf16.msrb.mxu2 %v1278_v6 }
  0x53   :  { %718 = vmatpush.bf16.msrb.mxu3 %v1286_v9  ;;  %680 = vmatmul.bf16.vlgmr.msrb.gmra.mxu0 %v100_v12 }
  0x54   :  { %693 = vmatmul.bf16.vlgmr.msrb.gmra.mxu1 %v101_v13  ;;  %794 = vmatpush.bf16.msra.mxu0 %v1301_v16 }
  0x55   :  { %706 = vmatmul.bf16.vlgmr.msrb.gmra.mxu2 %v102_v14  ;;  %877 = vmatpush.bf16.msra.mxu1 %v1309_v34 }
  0x56   :  { %719 = vmatmul.bf16.vlgmr.msrb.gmra.mxu3 %v103_v15 }
  0x58   :  { %795 = vmatpush.bf16.msra.mxu0 %v1300_v17 }
  0x59   :  { %878 = vmatpush.bf16.msra.mxu1 %v1308_v35 }
  0x5c   :  { %796 = vmatpush.bf16.msra.mxu0 %v1299_v18 }
  0x5d   :  { %879 = vmatpush.bf16.msra.mxu1 %v1307_v37 }
  0x60   :  { %797 = vmatpush.bf16.msra.mxu0 %v1298_v19 }
  0x61   :  { %880 = vmatpush.bf16.msra.mxu1 %v1306_v39 }
  0x64   :  { %798 = vmatpush.bf16.msra.mxu0 %v1297_v21 }
  0x65   :  { %881 = vmatpush.bf16.msra.mxu1 %v1305_v44 }
  0x68   :  { %799 = vmatpush.bf16.msra.mxu0 %v1296_v23 }
  0x69   :  { %882 = vmatpush.bf16.msra.mxu1 %v1304_v56 }
  0x6c   :  { %800 = vmatpush.bf16.msra.mxu0 %v1295_v28 }
  0x6d   :  { %883 = vmatpush.bf16.msra.mxu1 %v1303_v57 }
  0x70   :  { %801 = vmatpush.bf16.msra.mxu0 %v1294_v30 }
  0x71   :  { %884 = vmatpush.bf16.msra.mxu1 %v1302_v58 }
  0xb0   :  { %v629_v20 = vpop.f32.mrf.mxu0 }
  0xb1   :  { %v642_v22 = vpop.f32.mrf.mxu1  ;;  %v630_v33 = vadd.f32 %v1317_v29, %v629_v20 }
  0xb3   :  { %v643_v36 = vadd.f32 %v642_v22, %v630_v33 }
  0xb8   :  { %v655_v24 = vpop.f32.mrf.mxu2  ;;  %v631_v26 = vpop.f32.mrf.mxu0 }
  0xb9   :  { %v668_v25 = vpop.f32.mrf.mxu3  ;;  %v644_v27 = vpop.f32.mrf.mxu1  ;;  %v656_v38 = vadd.f32 %v655_v24, %v643_v36 }
  0xbb   :  { %v669_v40 = vadd.f32 %v668_v25, %v656_v38 }
  0xc0   :  { %v657_v31 = vpop.f32.mrf.mxu2 }
  0xc1   :  { %v670_v32 = vpop.f32.mrf.mxu3 }
  0xd0   :  { %v681_v41 = vpop.f32.mrf.mxu0 }
  0xd1   :  { %v694_v42 = vpop.f32.mrf.mxu1  ;;  %v682_v43 = vadd.f32 %v681_v41, %v669_v40 }
  0xd3   :  { %v695_v45 = vadd.f32 %v694_v42, %v682_v43 }
  0xd8   :  { %v707_v46 = vpop.f32.mrf.mxu2  ;;  %v683_v49 = vpop.f32.mrf.mxu0 }
  0xd9   :  { %v720_v47 = vpop.f32.mrf.mxu3  ;;  %v708_v48 = vadd.f32 %v707_v46, %v695_v45  ;;  %v696_v50 = vpop.f32.mrf.mxu1 }
  0xdb   :  { %v721_v51 = vadd.f32 %v720_v47, %v708_v48 }
  0xdd   :  { %1320 = vtanh.f32 %v721_v51 }
  0xe0   :  { %v709_v52 = vpop.f32.mrf.mxu2 }
  0xe1   :  { %v722_v53 = vpop.f32.mrf.mxu3 }
  0xe3   :  { %v1321_v54 = vpop.eup %1320 }
  0xe4   :  { %v725_v55 = vpack.c.bf16 %v1321_v54, %v1321_v54 }
  0xe6   :  { %802 = vmatmul.bf16.vlgmr.msra.gmra.mxu0 %v725_v55 }
 0x163   :  { %v803_v60 = vpop.f32.mrf.mxu0 }
 0x164   :  { %v804_v61 = vadd.f32 %v1318_v59, %v803_v60 }
 0x166   :  { %1322 = vtanh.f32 %v804_v61 }
 0x16b   :  { %v805_v62 = vpop.f32.mrf.mxu0 }
 0x16c   :  { %v1323_v63 = vpop.eup %1322 }
 0x16d   :  { %v808_v0 = vpack.c.bf16 %v1323_v63, %v1323_v63 }
 0x16f   :  { %885 = vmatmul.bf16.vlgmr.msra.gmra.mxu1 %v808_v0 }
 0x1ec   :  { %v886_v2 = vpop.f32.mrf.mxu1 }
 0x1ed   :  { %v887_v3 = vadd.f32 %v1319_v1, %v886_v2 }
 0x1ef   :  { %890 = vst [vmem:[#allocation10] sm:$0xff] %v887_v3 }
 0x1f0   :  { %901 = dma.vmem_to_hbm [thread:$0]  %s897_s25, 128, %s899_s28, [#allocation4]  }
 0x1f4   :  { %v888_v4 = vpop.f32.mrf.mxu1 }
 0x1f5   :  { %1450 = dma.done.wait [#allocation4], 128  }
 0x1f6   :  { %1451 = vsyncadd [#allocation4], 4294967168 }
 0x1f7   :  { %906 = vsyncpa [#allocation3], 1 }
 0x1f8   :  { %907 = vsyncpa [#allocation6], 1 }
 0x1f9   :  { %908 = vsyncpa [#allocation9], 1 }
 0x1fa   :  { %909 = vsyncpa [#allocation4], 1 }

</bundles_post_ra>
